<compile_context>
chip_gen: v7x
topology: tpu7x:2x2x1
jax: 0.10.0
libtpu: 0.0.40
codegen_flags: <defaults>
</compile_context>

<pallas_src>
import jax
import jax.numpy as jnp
from jax.experimental import pallas as pl
from jax.experimental.pallas import tpu as pltpu


def _seg_mlp_kernel(w_ref, b_ref, x_ref, o_ref):
    # x_ref: (TM, D), w_ref: (D, P), b_ref: (1, P), o_ref: (TM, P)
    y = jnp.dot(x_ref[...], w_ref[...], preferred_element_type=jnp.float32)
    o_ref[...] = (y + b_ref[...]).astype(o_ref.dtype)


def _pair(v):
    return (v, v) if isinstance(v, int) else (v[0], v[1])


def _pick_row_tile(m, max_tile=512):
    """Largest multiple-of-8 divisor of m that is <= max_tile (else full m)."""
    if m <= max_tile:
        return m
    start = max_tile - (max_tile % 8)
    for t in range(start, 7, -8):
        if m % t == 0:
            return t
    return m  # fall back to a single full-row block (still a valid BlockSpec)


def seg_mlp_head_forward(x, weight, bias, *, n_class, image_size, patch_size,
                         max_row_tile=512):
    """x: (B, 1 + nh*nw, dim); weight: (patch_dim, dim) torch-Linear layout;
    bias: (patch_dim,).  Returns (B, n_class, H, W)."""
    B, S, D = x.shape
    H, W = _pair(image_size)
    PH, PW = _pair(patch_size)
    assert H % PH == 0 and W % PW == 0, "image must be divisible by patch size"
    nh, nw = H // PH, W // PW
    NP = nh * nw
    assert S == NP + 1, "expected a class token at position 0"
    P = PH * PW * n_class
    assert weight.shape == (P, D) and bias.shape == (P,)

    # Drop the class token; flatten (batch, tokens) into one row axis so a
    # single grid step processes many batch elements.
    xs = x[:, 1:, :].reshape(B * NP, D)
    wt = jnp.transpose(weight)          # (D, P): lane-dense output along P
    b2 = bias.reshape(1, P)

    M = B * NP
    TM = _pick_row_tile(M, max_row_tile)

    out = pl.pallas_call(
        _seg_mlp_kernel,
        out_shape=jax.ShapeDtypeStruct((M, P), x.dtype),
        grid_spec=pltpu.PrefetchScalarGridSpec(
            num_scalar_prefetch=0,
            grid=(M // TM,),
            in_specs=[
                pl.BlockSpec((D, P), lambda i: (0, 0)),    # weight (resident)
                pl.BlockSpec((1, P), lambda i: (0, 0)),    # bias   (resident)
                pl.BlockSpec((TM, D), lambda i: (i, 0)),   # row tile of tokens
            ],
            out_specs=pl.BlockSpec((TM, P), lambda i: (i, 0)),
        ),
        compiler_params=pltpu.CompilerParams(
            dimension_semantics=("parallel",)),
    )(wt, b2, xs)

    # einops Rearrange 'b (nh nw) (p1 p2 c) -> b c (nh p1) (nw p2)'
    # (pure permutation, zero FLOPs — done outside the kernel).
    y = out.reshape(B, nh, nw, PH, PW, n_class)
    return y.transpose(0, 5, 1, 3, 2, 4).reshape(B, n_class, nh * PH, nw * PW)


def seg_mlp_head_reference(x, weight, bias, *, n_class, image_size, patch_size):
    """Pure-JAX replica of the PyTorch forward (exact slice/rearrange semantics)."""
    B, S, D = x.shape
    H, W = _pair(image_size)
    PH, PW = _pair(patch_size)
    nh, nw = H // PH, W // PW
    y = jnp.einsum('bsd,pd->bsp', x, weight) + bias    # nn.Linear
    y = y[:, 1:, :]                                    # drop class token
    y = y.reshape(B, nh, nw, PH, PW, n_class)
    return y.transpose(0, 5, 1, 3, 2, 4).reshape(B, n_class, nh * PH, nw * PW)


if __name__ == "__main__":
    # Small shapes consistent with the module:
    #   dim=32, n_class=4, image_size=16, patch_size=4
    #   -> nh=nw=4, num_patches=16, seq=17, patch_dim=4*4*4=64
    B, DIM, N_CLASS, IMG, PATCH = 2, 32, 4, 16, 4
    NH = NW = IMG // PATCH
    SEQ = NH * NW + 1
    PATCH_DIM = PATCH * PATCH * N_CLASS

    key = jax.random.PRNGKey(0)
    kx, kw, kb = jax.random.split(key, 3)
    x = jax.random.normal(kx, (B, SEQ, DIM), dtype=jnp.float32)
    weight = 0.1 * jax.random.normal(kw, (PATCH_DIM, DIM), dtype=jnp.float32)
    bias = 0.1 * jax.random.normal(kb, (PATCH_DIM,), dtype=jnp.float32)

    out = seg_mlp_head_forward(x, weight, bias, n_class=N_CLASS,
                               image_size=IMG, patch_size=PATCH)
    out = jax.block_until_ready(out)

    ref = seg_mlp_head_reference(x, weight, bias, n_class=N_CLASS,
                                 image_size=IMG, patch_size=PATCH)
    assert out.shape == (B, N_CLASS, IMG, IMG), out.shape
    assert jnp.allclose(out, ref, atol=1e-4, rtol=1e-4), (
        float(jnp.max(jnp.abs(out - ref))))

    print("KERNEL_OK")
</pallas_src>

<mosaic_0001>
module attributes {stable_mosaic.version = 11 : i64} {
  func.func @_seg_mlp_kernel(%arg0: i32, %arg1: memref<32x64xf32, #tpu.memory_space<vmem>>, %arg2: memref<1x64xf32, #tpu.memory_space<vmem>>, %arg3: memref<32x32xf32, #tpu.memory_space<vmem>>, %arg4: memref<32x64xf32, #tpu.memory_space<vmem>>) attributes {dimension_semantics = [#tpu.dimension_semantics<parallel>], iteration_bounds = array<i64: 1>, scalar_prefetch = 0 : i64, scratch_operands = 0 : i64, tpu.core_type = #tpu.core_type<tc>, window_params = [{pipeline_mode = #tpu.pipeline_mode<synchronous>, transform_indices = @transform_0, window_bounds = array<i64: 32, 64>}, {pipeline_mode = #tpu.pipeline_mode<synchronous>, transform_indices = @transform_1, window_bounds = array<i64: 1, 64>}, {transform_indices = @transform_2, window_bounds = array<i64: 32, 32>}, {transform_indices = @transform_3, window_bounds = array<i64: 32, 64>}]} {
    %c0 = arith.constant 0 : index
    %c0_0 = arith.constant 0 : index
    %0 = vector.load %arg3[%c0, %c0_0] : memref<32x32xf32, #tpu.memory_space<vmem>>, vector<32x32xf32>
    %c0_1 = arith.constant 0 : index
    %c0_2 = arith.constant 0 : index
    %1 = vector.load %arg1[%c0_1, %c0_2] : memref<32x64xf32, #tpu.memory_space<vmem>>, vector<32x64xf32>
    %cst = arith.constant dense<0.000000e+00> : vector<32x64xf32>
    %2 = tpu.matmul %0, %1, %cst {dimension_numbers = #tpu.dot_dimension_numbers<[1], [0], [0], [1], [0, 0, 1, 1], [], []>} : vector<32x32xf32>, vector<32x64xf32>, vector<32x64xf32> -> vector<32x64xf32>
    %c0_3 = arith.constant 0 : index
    %c0_4 = arith.constant 0 : index
    %3 = vector.load %arg2[%c0_3, %c0_4] : memref<1x64xf32, #tpu.memory_space<vmem>>, vector<1x64xf32>
    %4 = vector.broadcast %3 : vector<1x64xf32> to vector<32x64xf32>
    %5 = arith.addf %2, %4 : vector<32x64xf32>
    %c0_5 = arith.constant 0 : index
    %c0_6 = arith.constant 0 : index
    %6 = vector.load %arg4[%c0_5, %c0_6] : memref<32x64xf32, #tpu.memory_space<vmem>>, vector<32x64xf32>
    tpu.vector_store %arg4[%c0_5, %c0_6], %5 {strides = array<i32>} : memref<32x64xf32, #tpu.memory_space<vmem>>, vector<32x64xf32>,
    return
  }
  func.func @transform_0(%arg0: i32) -> (i32, i32) {
    %c0_i32 = arith.constant 0 : i32
    %c0_i32_0 = arith.constant 0 : i32
    %c0_i32_1 = arith.constant 0 : i32
    return %c0_i32, %c0_i32_0 : i32, i32
  }
  func.func @transform_1(%arg0: i32) -> (i32, i32) {
    %c0_i32 = arith.constant 0 : i32
    %c0_i32_0 = arith.constant 0 : i32
    %c0_i32_1 = arith.constant 0 : i32
    return %c0_i32, %c0_i32_0 : i32, i32
  }
  func.func @transform_2(%arg0: i32) -> (i32, i32) {
    %c0_i32 = arith.constant 0 : i32
    %c0_i32_0 = arith.constant 0 : i32
    return %arg0, %c0_i32 : i32, i32
  }
  func.func @transform_3(%arg0: i32) -> (i32, i32) {
    %c0_i32 = arith.constant 0 : i32
    %c0_i32_0 = arith.constant 0 : i32
    return %arg0, %c0_i32 : i32, i32
  }
}

</mosaic_0001>

<bundles_post_ra>
// kernel: tpu_custom_call.1
= control target key start
LH: loop header
LB: loop body
LE: loop exit
PB: predicated region body
PF: predicated region fallthrough
CT: control target
= control target key end

     0   :  { %8 = vsyncpa [#allocation3], 0  ;;  %s372_s0 = inlined_call_operand.hbm [shape: f32[32,64], index: 0, kind: input, shape index: {}]   ;;  %s373_s1 = inlined_call_operand.vmem [shape: f32[1,64], index: 1, kind: input, shape index: {}]   ;;  %s374_s2 = inlined_call_operand.hbm [shape: f32[32,32], index: 2, kind: input, shape index: {}]   ;;  %s375_s3 = inlined_call_operand.hbm [shape: f32[32,64], index: 3, kind: output, shape index: {}]  }
   0x1   :  { %9 = vsyncpa [#allocation6], 0 }
   0x2   :  { %10 = vsyncpa [#allocation4], 0  ;;  %s295_s12 = smov [#allocation2]   ;;  %s223_s16 = scalar_lea.hbm %s372_s0, 512 }
   0x3   :  { %s16_s13 = sshll.u32 %s295_s12, 4  ;;  %p224_p0 = scmp.ne.s32.totalorder %s372_s0, %s223_s16  ;;  %s17_s13 = int_to_ptr.vmem [resolvable:$true] %s16_s13 }
   0x4   :  { %p227_p1 = scmp.lt.u32.totalorder %s223_s16, %s372_s0 }
   0x6   :  { %p229_p2 = pnand %p227_p1, %p224_p0 }
   0x8   :  { %232 = shalt.err (!%p229_p2)
}
   0x9   :  { %s233_s21 = scalar_lea.vmem %s17_s13, 512  ;;  %p238_p4 = scmp.lt.s32.totalorder %s17_s13, %s17_s13 }
   0xa   :  { %p234_p3 = scmp.ne.s32.totalorder %s17_s13, %s233_s21  ;;  %p239_p5 = scmp.lt.s32.totalorder %s233_s21, %s233_s21 }
   0xc   :  { %p240_p6 = por %p239_p5, %p238_p4 }
   0xe   :  { %p241_p7 = pnand %p240_p6, %p234_p3 }
  0x10   :  { %244 = shalt.err (!%p241_p7)
}
  0x11   :  { %s296_s22 = smov 128   ;;  %s297_s23 = smov 8  }
  0x12   :  { %22 = dma.hbm_to_vmem [thread:$0]  %s372_s0, 512, %s17_s13, [#allocation3], %s296_s22, %s296_s22, %s297_s23  }
  0x13   :  { %s298_s26 = smov [#allocation5]   ;;  %s245_s30 = scalar_lea.hbm %s374_s2, 512 }
  0x14   :  { %s30_s27 = sshll.u32 %s298_s26, 4  ;;  %p246_p8 = scmp.ne.s32.totalorder %s374_s2, %s245_s30  ;;  %s31_s27 = int_to_ptr.vmem [resolvable:$true] %s30_s27 }
  0x15   :  { %p249_p9 = scmp.lt.u32.totalorder %s245_s30, %s374_s2 }
  0x17   :  { %p251_p10 = pnand %p249_p9, %p246_p8 }
  0x19   :  { %254 = shalt.err (!%p251_p10)
}
  0x1a   :  { %s255_s8 = scalar_lea.vmem %s31_s27, 512  ;;  %p260_p12 = scmp.lt.s32.totalorder %s31_s27, %s31_s27 }
  0x1b   :  { %p256_p11 = scmp.ne.s32.totalorder %s31_s27, %s255_s8  ;;  %p261_p13 = scmp.lt.s32.totalorder %s255_s8, %s255_s8 }
  0x1d   :  { %p262_p0 = por %p261_p13, %p260_p12 }
  0x1f   :  { %p263_p1 = pnand %p262_p0, %p256_p11 }
  0x21   :  { %266 = shalt.err (!%p263_p1)
}
  0x22   :  { %36 = dma.hbm_to_vmem [thread:$0]  %s374_s2, 512, %s31_s27, [#allocation6], %s296_s22, %s296_s22, %s297_s23  }
  0x23   :  { %289 = dma.done.wait [#allocation3], 512  }
  0x24   :  { %290 = vsyncadd [#allocation3], 4294966784 }
  0x25   :  { %291 = dma.done.wait [#allocation6], 512  }
  0x26   :  { %292 = vsyncadd [#allocation6], 4294966784  ;;  %vm58_vm0 = vcmask 261120   ;;  %v47_v0 = vld [vmem:[#allocation2] sm:$0xff]  ;;  %v48_v1 = vld [vmem:[#allocation2 + $0x8] sm:$0xff]  ;;  %s299_s11 = smov [#allocation7]  }
  0x27   :  { %v49_v2 = vld [vmem:[#allocation2 + $0x10] sm:$0xff]  ;;  %v206_v3 = vpack.c.bf16 %v48_v1, %v47_v0  ;;  %v50_v4 = vld [vmem:[#allocation2 + $0x18] sm:$0xff]  ;;  %v43_v5 = vld [vmem:[#allocation5] sm:$0xff]  ;;  %s166_s12 = sshll.u32 %s299_s11, 4  ;;  %vm156_vm1 = vcmask 523264   ;;  %s167_s12 = int_to_ptr.vmem [resolvable:$true] %s166_s12 }
  0x28   :  { %v45_v6 = vld [vmem:[#allocation5 + $0x10] sm:$0xff]  ;;  %v210_v7 = vpack.c.bf16 %v50_v4, %v49_v2  ;;  %200 = vmatprep.mubr.msk.f32.mxu0 %vm58_vm0, %v43_v5  ;;  %v44_v8 = vld [vmem:[#allocation5 + $0x8] sm:$0xff]  ;;  %v46_v9 = vld [vmem:[#allocation5 + $0x18] sm:$0xff]  ;;  %s267_s13 = scalar_lea.vmem %s167_s12, 512  ;;  %p272_p3 = scmp.lt.s32.totalorder %s167_s12, %s167_s12 }
  0x29   :  { %203 = vmatprep.mubr.msk.f32.mxu1 %vm58_vm0, %v45_v6  ;;  %207 = vmatprep.subr.bf16.mxu0 %v206_v3  ;;  %v179_v10 = vld [vmem:[%s373_s1] ss:$0 sm:$0xff]  ;;  %p268_p2 = scmp.ne.s32.totalorder %s167_s12, %s267_s13  ;;  %p273_p4 = scmp.lt.s32.totalorder %s267_s13, %s267_s13 }
  0x2a   :  { %214 = vmatprep.subr.bf16.mxu1 %v206_v3  ;;  %209 = vmatpush3.bf16.msra.mxu0 %v206_v3 }
  0x2b   :  { %216 = vmatpush3.bf16.msra.mxu1 %v206_v3  ;;  %211 = vmatprep.subr.bf16.mxu0 %v210_v7  ;;  %p274_p5 = por %p273_p4, %p272_p3 }
  0x2c   :  { %215 = vmatprep.subr.bf16.mxu1 %v210_v7 }
  0x2d   :  { %p275_p6 = pnand %p274_p5, %p268_p2 }
  0x2e   :  { %213 = vmatpush3.bf16.msra.mxu0 %v210_v7 }
  0x2f   :  { %217 = vmatpush3.bf16.msra.mxu1 %v210_v7 }
  0x31   :  { %201 = vmatmul.mubr.msk.f32.vlgmr.msra.gmra.mrb[0].mxu0 %vm58_vm0, %v44_v8 }
  0x32   :  { %204 = vmatmul.mubr.msk.f32.vlgmr.msra.gmra.mrb[0].mxu1 %vm58_vm0, %v46_v9 }
 0x104   :  { %v202_v11 = vpop.f32.mrb[0].mxu0 }
 0x105   :  { %v205_v12 = vpop.f32.mrb[0].mxu1  ;;  %v143_v13 = vadd.f32 %v202_v11, %v179_v10  ;;  %v137_v15 = vpop.f32.mrb[1].mxu0 }
 0x106   :  { %v153_v14 = vadd.f32 %v205_v12, %v179_v10  ;;  %v147_v16 = vpop.f32.mrb[1].mxu1  ;;  %v138_v17 = vadd.f32 %v179_v10, %v137_v15 }
 0x107   :  { %v148_v18 = vadd.f32 %v179_v10, %v147_v16  ;;  %158 = vst.msk [vmem:[#allocation7 + $0x8] sm:$0xff] %vm156_vm1, %v143_v13 }
 0x108   :  { %160 = vst.msk [vmem:[#allocation7 + $0x18] sm:$0xff] %vm156_vm1, %v153_v14  ;;  %157 = vst.msk [vmem:[#allocation7] sm:$0xff] %vm156_vm1, %v138_v17 }
 0x109   :  { %159 = vst.msk [vmem:[#allocation7 + $0x10] sm:$0xff] %vm156_vm1, %v148_v18 }
 0x10a   :  { %278 = shalt.err (!%p275_p6)
}
 0x10b   :  { %s279_s15 = scalar_lea.hbm %s375_s3, 512 }
 0x10c   :  { %p280_p7 = scmp.ne.s32.totalorder %s375_s3, %s279_s15  ;;  %p283_p8 = scmp.lt.u32.totalorder %s279_s15, %s375_s3 }
 0x10e   :  { %p285_p9 = pnand %p283_p8, %p280_p7 }
 0x110   :  { %288 = shalt.err (!%p285_p9)
}
 0x111   :  { %172 = dma.vmem_to_hbm [thread:$0]  %s167_s12, 512, %s375_s3, [#allocation4], %s296_s22, %s296_s22, %s297_s23  }
 0x112   :  { %293 = dma.done.wait [#allocation4], 512  }
 0x113   :  { %294 = vsyncadd [#allocation4], 4294966784 }
 0x114   :  { %176 = vsyncpa [#allocation3], 1 }
 0x115   :  { %177 = vsyncpa [#allocation6], 1 }
 0x116   :  { %178 = vsyncpa [#allocation4], 1 }

</bundles_post_ra>
